<compile_context>
chip_gen: v6e
topology: v6e:2x2x1
jax: 0.10.0
libtpu: 0.0.40
codegen_flags: <defaults>
</compile_context>

<pallas_src>
import functools

import jax
import jax.numpy as jnp
from jax.experimental import pallas as pl
from jax.experimental.pallas import tpu as pltpu


def _round_up(x, m):
    return (x + m - 1) // m * m


def _vmem_capacity_bytes():
    """Per-TensorCore VMEM capacity; conservative v7x default if unknown."""
    try:
        cap = int(pltpu.get_tpu_info().vmem_capacity_bytes)
        if cap > 0:
            return cap
    except Exception:
        pass
    return 64 * 1024 * 1024


def _vmem_budget_and_limit():
    cap = _vmem_capacity_bytes()
    # v7x (64 MiB/TC): limit 48 MiB, tile budget ~24 MiB.
    # v5e/v6e (128 MiB): limit 96 MiB, tile budget ~48 MiB.
    limit = min((cap * 3) // 4, 96 * 1024 * 1024)
    budget = min((cap * 3) // 8, limit // 2)
    return budget, limit


def _pick_tile_rows(rows_total, width, itemsize, budget_bytes):
    """Largest batch-row tile fitting the VMEM budget, with >=2 grid steps."""
    sub = max(8, 32 // itemsize)          # native sublane multiple per dtype
    width_pad = _round_up(width, 128)     # VMEM blocks are lane-padded to 128
    bytes_per_row = (
        3 * 2 * width_pad * itemsize      # 3 inputs x double-buffered blocks
        + 2 * 128 * 4                     # lane-padded f32 output, 2 buffers
        + 4 * width_pad * 4               # f32 temporaries headroom
    )
    tile = max(sub, budget_bytes // bytes_per_row)
    tile = min(tile, 8192)                # already many MiB of input per step
    # Keep >=2 (ideally >=4) grid steps so ("parallel",) feeds both v7x TCs.
    if rows_total >= 4 * sub:
        tile = min(tile, _round_up(pl.cdiv(rows_total, 4), sub))
    elif rows_total >= 2 * sub:
        tile = min(tile, _round_up(pl.cdiv(rows_total, 2), sub))
    tile = max(sub, (tile // sub) * sub)
    if tile >= rows_total:
        return rows_total                 # single full-extent block (always legal)
    return tile


def _triplet_kernel(a_ref, p_ref, n_ref, loss_ref, *, margin, d, pack):
    """One batch-row tile: per-sample hinge losses -> (tile, pack) block."""
    a = a_ref[...].astype(jnp.float32)
    p = p_ref[...].astype(jnp.float32)
    n = n_ref[...].astype(jnp.float32)

    dp = a - p
    dn = a - n
    # Fused ||a-p||^2 - ||a-n||^2 contribution per feature (single reduction).
    contrib = dp * dp - dn * dn                                   # (tile, width)

    if pack == 1:
        diff = jnp.sum(contrib, axis=1, keepdims=True)            # (tile, 1)
    else:
        # Segmented lane reduction via the (idle) MXU: constant 0/1 segment
        # matrix, seg[l, j] = 1 iff lane l belongs to packed sample j.
        width = pack * d                                          # == 128
        lane = jax.lax.broadcasted_iota(jnp.int32, (width, width), 0)
        col = jax.lax.broadcasted_iota(jnp.int32, (width, width), 1)
        seg = ((lane >= col * d) & (lane < (col + 1) * d)).astype(jnp.float32)
        diff = jnp.dot(contrib, seg,
                       preferred_element_type=jnp.float32)[:, :pack]

    loss_ref[...] = jnp.maximum(diff + jnp.float32(margin), 0.0)


def triplet_loss(anchor, positive, negative, *, margin, size_average=True,
                 tile_rows=None):
    """Pallas implementation of TripletLoss.forward."""
    assert anchor.shape == positive.shape == negative.shape
    assert anchor.ndim == 2
    b, d = anchor.shape
    itemsize = jnp.dtype(anchor.dtype).itemsize

    # Pack 128/D samples per 128-lane row when possible (free reshape of
    # contiguous row-major data in the wrapper; no HBM copy).
    pack = 1
    if d < 128 and 128 % d == 0 and b % (128 // d) == 0:
        pack = 128 // d
    rows_total = b // pack
    width = d * pack

    a_view = anchor.reshape(rows_total, width)
    p_view = positive.reshape(rows_total, width)
    n_view = negative.reshape(rows_total, width)

    budget, vmem_limit = _vmem_budget_and_limit()
    if tile_rows is None:
        tile = _pick_tile_rows(rows_total, width, itemsize, budget)
    else:
        sub = max(8, 32 // itemsize)
        tile = min(int(tile_rows), rows_total)
        if tile < rows_total:
            tile = max(sub, (tile // sub) * sub)

    num_tiles = pl.cdiv(rows_total, tile)
    kernel = functools.partial(_triplet_kernel, margin=float(margin),
                               d=d, pack=pack)

    losses = pl.pallas_call(
        kernel,
        out_shape=jax.ShapeDtypeStruct((rows_total, pack), jnp.float32),
        grid=(num_tiles,),
        in_specs=[pl.BlockSpec((tile, width), lambda i: (i, 0))
                  for _ in range(3)],
        out_specs=pl.BlockSpec((tile, pack), lambda i: (i, 0)),
        compiler_params=pltpu.CompilerParams(
            dimension_semantics=("parallel",),
            vmem_limit_bytes=int(vmem_limit),
        ),
    )(a_view, p_view, n_view)

    # (rows_total, pack) flattens row-major to exactly b per-sample losses in
    # original order; ragged-tail stores were masked by Pallas.
    losses = losses.reshape(-1)
    return jnp.mean(losses) if size_average else jnp.sum(losses)


def _reference(anchor, positive, negative, margin, size_average=True):
    dp = jnp.sum((anchor - positive) ** 2, axis=1)
    dn = jnp.sum((anchor - negative) ** 2, axis=1)
    losses = jnp.maximum(dp - dn + margin, 0.0)
    return jnp.mean(losses) if size_average else jnp.sum(losses)


if __name__ == "__main__":
    margin = 1.0  # deterministic "parameter" from __init__

    key = jax.random.PRNGKey(0)
    ka, kp, kn, k3a, k3p, k3n = jax.random.split(key, 6)

    # Case 1: D divides 128 -> packed path (4 samples per 128-lane row).
    B, D = 16, 32
    anchor = jax.random.normal(ka, (B, D), dtype=jnp.float32)
    positive = jax.random.normal(kp, (B, D), dtype=jnp.float32)
    negative = jax.random.normal(kn, (B, D), dtype=jnp.float32)
    out = jax.block_until_ready(
        triplet_loss(anchor, positive, negative, margin=margin))
    ref = _reference(anchor, positive, negative, margin)
    assert jnp.allclose(out, ref, rtol=1e-5, atol=1e-5), (out, ref)

    # Case 2: batch not divisible by the pack factor -> unpacked fallback,
    # single full-extent block, size_average=False.
    out2 = jax.block_until_ready(
        triplet_loss(anchor[:13], positive[:13], negative[:13],
                     margin=margin, size_average=False))
    ref2 = _reference(anchor[:13], positive[:13], negative[:13], margin,
                      size_average=False)
    assert jnp.allclose(out2, ref2, rtol=1e-5, atol=1e-5), (out2, ref2)

    # Case 3: multi-tile grid with a ragged last block (no padding; Pallas
    # masks the out-of-range output rows).
    B3, D3 = 20, 48  # 128 % 48 != 0 -> unpacked path
    a3 = jax.random.normal(k3a, (B3, D3), dtype=jnp.float32)
    p3 = jax.random.normal(k3p, (B3, D3), dtype=jnp.float32)
    n3 = jax.random.normal(k3n, (B3, D3), dtype=jnp.float32)
    out3 = jax.block_until_ready(
        triplet_loss(a3, p3, n3, margin=margin, tile_rows=8))
    ref3 = _reference(a3, p3, n3, margin)
    assert jnp.allclose(out3, ref3, rtol=1e-5, atol=1e-5), (out3, ref3)

    print("KERNEL_OK")
</pallas_src>

<mosaic_0001>
module attributes {stable_mosaic.version = 11 : i64} {
  func.func @_triplet_kernel(%arg0: i32, %arg1: memref<4x128xf32, #tpu.memory_space<vmem>>, %arg2: memref<4x128xf32, #tpu.memory_space<vmem>>, %arg3: memref<4x128xf32, #tpu.memory_space<vmem>>, %arg4: memref<4x4xf32, #tpu.memory_space<vmem>>) attributes {dimension_semantics = [#tpu.dimension_semantics<parallel>], iteration_bounds = array<i64: 1>, scalar_prefetch = 0 : i64, scratch_operands = 0 : i64, tpu.core_type = #tpu.core_type<tc>, window_params = [{transform_indices = @transform_0, window_bounds = array<i64: 4, 128>}, {transform_indices = @transform_1, window_bounds = array<i64: 4, 128>}, {transform_indices = @transform_2, window_bounds = array<i64: 4, 128>}, {transform_indices = @transform_3, window_bounds = array<i64: 4, 4>}]} {
    %c0 = arith.constant 0 : index
    %c0_0 = arith.constant 0 : index
    %0 = vector.load %arg1[%c0, %c0_0] : memref<4x128xf32, #tpu.memory_space<vmem>>, vector<4x128xf32>
    %c0_1 = arith.constant 0 : index
    %c0_2 = arith.constant 0 : index
    %1 = vector.load %arg2[%c0_1, %c0_2] : memref<4x128xf32, #tpu.memory_space<vmem>>, vector<4x128xf32>
    %c0_3 = arith.constant 0 : index
    %c0_4 = arith.constant 0 : index
    %2 = vector.load %arg3[%c0_3, %c0_4] : memref<4x128xf32, #tpu.memory_space<vmem>>, vector<4x128xf32>
    %3 = arith.subf %0, %1 : vector<4x128xf32>
    %4 = arith.subf %0, %2 : vector<4x128xf32>
    %5 = arith.mulf %3, %3 : vector<4x128xf32>
    %6 = arith.mulf %4, %4 : vector<4x128xf32>
    %7 = arith.subf %5, %6 : vector<4x128xf32>
    %8 = tpu.iota {dimensions = array<i32: 0>} : vector<128x128xi32>
    %9 = tpu.iota {dimensions = array<i32: 1>} : vector<128x128xi32>
    %c32_i32 = arith.constant 32 : i32
    %10 = vector.broadcast %c32_i32 : i32 to vector<128x128xi32>
    %11 = arith.muli %9, %10 : vector<128x128xi32>
    %12 = arith.cmpi sge, %8, %11 : vector<128x128xi32>
    %c1_i32 = arith.constant 1 : i32
    %13 = vector.broadcast %c1_i32 : i32 to vector<128x128xi32>
    %14 = arith.addi %9, %13 : vector<128x128xi32>
    %c32_i32_5 = arith.constant 32 : i32
    %15 = vector.broadcast %c32_i32_5 : i32 to vector<128x128xi32>
    %16 = arith.muli %14, %15 : vector<128x128xi32>
    %17 = arith.cmpi slt, %8, %16 : vector<128x128xi32>
    %18 = arith.andi %12, %17 : vector<128x128xi1>
    %19 = arith.extui %18 : vector<128x128xi1> to vector<128x128xi32>
    %20 = arith.sitofp %19 : vector<128x128xi32> to vector<128x128xf32>
    %cst = arith.constant dense<0.000000e+00> : vector<4x128xf32>
    %21 = tpu.matmul %7, %20, %cst {dimension_numbers = #tpu.dot_dimension_numbers<[1], [0], [0], [1], [0, 0, 1, 1], [], []>} : vector<4x128xf32>, vector<128x128xf32>, vector<4x128xf32> -> vector<4x128xf32>
    %22 = vector.extract_strided_slice %21 {offsets = [0, 0], sizes = [4, 4], strides = [1, 1]} : vector<4x128xf32> to vector<4x4xf32>
    %cst_6 = arith.constant 1.000000e+00 : f32
    %23 = vector.broadcast %cst_6 : f32 to vector<4x4xf32>
    %24 = arith.addf %22, %23 : vector<4x4xf32>
    %cst_7 = arith.constant 0.000000e+00 : f32
    %25 = vector.broadcast %cst_7 : f32 to vector<4x4xf32>
    %26 = arith.maximumf %24, %25 : vector<4x4xf32>
    %c0_8 = arith.constant 0 : index
    %c0_9 = arith.constant 0 : index
    %27 = vector.load %arg4[%c0_8, %c0_9] : memref<4x4xf32, #tpu.memory_space<vmem>>, vector<4x4xf32>
    tpu.vector_store %arg4[%c0_8, %c0_9], %26 {strides = array<i32>} : memref<4x4xf32, #tpu.memory_space<vmem>>, vector<4x4xf32>,
    return
  }
  func.func @transform_0(%arg0: i32) -> (i32, i32) {
    %c0_i32 = arith.constant 0 : i32
    %c0_i32_0 = arith.constant 0 : i32
    return %arg0, %c0_i32 : i32, i32
  }
  func.func @transform_1(%arg0: i32) -> (i32, i32) {
    %c0_i32 = arith.constant 0 : i32
    %c0_i32_0 = arith.constant 0 : i32
    return %arg0, %c0_i32 : i32, i32
  }
  func.func @transform_2(%arg0: i32) -> (i32, i32) {
    %c0_i32 = arith.constant 0 : i32
    %c0_i32_0 = arith.constant 0 : i32
    return %arg0, %c0_i32 : i32, i32
  }
  func.func @transform_3(%arg0: i32) -> (i32, i32) {
    %c0_i32 = arith.constant 0 : i32
    %c0_i32_0 = arith.constant 0 : i32
    return %arg0, %c0_i32 : i32, i32
  }
}

</mosaic_0001>

<bundles_post_ra>
// kernel: tpu_custom_call.1
= control target key start
LH: loop header
LB: loop body
LE: loop exit
PB: predicated region body
PF: predicated region fallthrough
CT: control target
= control target key end

     0   :  { %8 = vsyncpa [#allocation3], 0  ;;  %s554_s0 = inlined_call_operand.hbm [shape: f32[4,128], index: 0, kind: input, shape index: {}]   ;;  %s555_s1 = inlined_call_operand.hbm [shape: f32[4,128], index: 1, kind: input, shape index: {}]   ;;  %s556_s2 = inlined_call_operand.hbm [shape: f32[4,128], index: 2, kind: input, shape index: {}]   ;;  %s557_s3 = inlined_call_operand.hbm [shape: f32[4,4], index: 3, kind: output, shape index: {}]  }
   0x1   :  { %9 = vsyncpa [#allocation6], 0 }
   0x2   :  { %10 = vsyncpa [#allocation4], 0  ;;  %s427_s12 = smov [#allocation5]   ;;  %s428_s14 = smov [#allocation2]  }
   0x3   :  { %s27_s13 = sshll.u32 %s427_s12, 4  ;;  %s17_s15 = sshll.u32 %s428_s14, 4  ;;  %s28_s13 = int_to_ptr.vmem [resolvable:$true] %s27_s13  ;;  %s18_s15 = int_to_ptr.vmem [resolvable:$true] %s17_s15 }
   0x4   :  { %s349_s16 = scalar_lea.vmem %s28_s13, 64  ;;  %p354_p1 = scmp.lt.s32.totalorder %s28_s13, %s28_s13 }
   0x5   :  { %p350_p0 = scmp.ne.s32.totalorder %s28_s13, %s349_s16  ;;  %p355_p2 = scmp.lt.s32.totalorder %s349_s16, %s349_s16 }
   0x7   :  { %p356_p3 = por %p355_p2, %p354_p1 }
   0x9   :  { %p357_p4 = pnand %p356_p3, %p350_p0 }
   0xb   :  { %360 = shalt.err (!%p357_p4)
}
   0xc   :  { %30 = dma.hbm_to_vmem [thread:$0]  %s555_s1, 64, %s28_s13, [#allocation6]  }
   0xd   :  { %s369_s19 = scalar_lea.vmem %s18_s15, 64  ;;  %p374_p6 = scmp.lt.s32.totalorder %s18_s15, %s18_s15 }
   0xe   :  { %p370_p5 = scmp.ne.s32.totalorder %s18_s15, %s369_s19  ;;  %p375_p7 = scmp.lt.s32.totalorder %s369_s19, %s369_s19 }
  0x10   :  { %p376_p8 = por %p375_p7, %p374_p6 }
  0x12   :  { %p377_p9 = pnand %p376_p8, %p370_p5 }
  0x14   :  { %380 = shalt.err (!%p377_p9)
}
  0x15   :  { %20 = dma.hbm_to_vmem [thread:$0]  %s554_s0, 64, %s18_s15, [#allocation3]  }
  0x16   :  { %s429_s22 = smov [#allocation7]  }
  0x17   :  { %s37_s23 = sshll.u32 %s429_s22, 4  ;;  %s38_s23 = int_to_ptr.vmem [resolvable:$true] %s37_s23 }
  0x18   :  { %s389_s24 = scalar_lea.vmem %s38_s23, 64  ;;  %p394_p11 = scmp.lt.s32.totalorder %s38_s23, %s38_s23 }
  0x19   :  { %p390_p10 = scmp.ne.s32.totalorder %s38_s23, %s389_s24  ;;  %p395_p12 = scmp.lt.s32.totalorder %s389_s24, %s389_s24 }
  0x1b   :  { %p396_p13 = por %p395_p12, %p394_p11 }
  0x1d   :  { %p397_p0 = pnand %p396_p13, %p390_p10 }
  0x1f   :  { %400 = shalt.err (!%p397_p0)
}
  0x20   :  { %40 = dma.hbm_to_vmem [thread:$0]  %s556_s2, 64, %s38_s23, [#allocation6]  }
  0x21   :  { %421 = dma.done.wait [#allocation3], 64  }
  0x22   :  { %422 = vsyncadd [#allocation3], 4294967232  ;;  %v58_v0 = vlaneseq }
  0x23   :  { %423 = dma.done.wait [#allocation6], 128  }
  0x24   :  { %424 = vsyncadd [#allocation6], 4294967168  ;;  %v430_v1 = vmov 0.0   ;;  %vm431_vm0 = vmmov 0   ;;  %v465_v2 = vshrl.u32 %v58_v0, 7  ;;  %v76_v3 = vand.u32 127, %v58_v0 }
  0x25   :  { %299 = vmatprep.subr.mxu0 %v430_v1  ;;  %331 = vmatprep.mubr.msk.f32.mxu0 %vm431_vm0, %v430_v1  ;;  %v432_v12 = vmov 1.0   ;;  %v50_v21 = vld [vmem:[#allocation2] sm:$0xf]  ;;  %v51_v23 = vld [vmem:[#allocation5] sm:$0xf]  ;;  %s433_s0 = smov [#allocation8]  }
  0x26   :  { %v74_v4 = vadd.s32 120, %v465_v2  ;;  %v468_v5 = vmul.u32 32, %v76_v3  ;;  %v94_v6 = vadd.s32 1, %v76_v3  ;;  %v73_v7 = vadd.s32 112, %v465_v2  ;;  %v52_v24 = vld [vmem:[#allocation7] sm:$0xf] }
  0x27   :  { %v72_v8 = vadd.s32 104, %v465_v2  ;;  %v71_v10 = vadd.s32 96, %v465_v2  ;;  %v70_v11 = vadd.s32 88, %v465_v2  ;;  %v69_v13 = vadd.s32 80, %v465_v2  ;;  %s240_s2 = sshll.u32 %s433_s0, 4  ;;  %s241_s2 = int_to_ptr.vmem [resolvable:$true] %s240_s2 }
  0x28   :  { %vm93_vm1 = vcmp.ge.s32.totalorder %v74_v4, %v468_v5  ;;  %v473_v9 = vmul.u32 32, %v94_v6  ;;  %vm92_vm2 = vcmp.ge.s32.totalorder %v73_v7, %v468_v5  ;;  %v68_v14 = vadd.s32 72, %v465_v2  ;;  %s401_s26 = scalar_lea.vmem %s241_s2, 64  ;;  %p406_p2 = scmp.lt.s32.totalorder %s241_s2, %s241_s2 }
  0x29   :  { %vm91_vm5 = vcmp.ge.s32.totalorder %v72_v8, %v468_v5  ;;  %vm90_vm9 = vcmp.ge.s32.totalorder %v71_v10, %v468_v5  ;;  %vm89_vm12 = vcmp.ge.s32.totalorder %v70_v11, %v468_v5  ;;  %vm88_vm15 = vcmp.ge.s32.totalorder %v69_v13, %v468_v5  ;;  %p402_p1 = scmp.ne.s32.totalorder %s241_s2, %s401_s26  ;;  %p407_p3 = scmp.lt.s32.totalorder %s401_s26, %s401_s26 }
  0x2a   :  { %vm111_vm3 = vcmp.lt.s32.totalorder %v74_v4, %v473_v9  ;;  %vm110_vm4 = vcmp.lt.s32.totalorder %v73_v7, %v473_v9  ;;  %vm109_vm6 = vcmp.lt.s32.totalorder %v72_v8, %v473_v9  ;;  %vm108_vm10 = vcmp.lt.s32.totalorder %v71_v10, %v473_v9 }
  0x2b   :  { %vm127_vm7 = vmand %vm93_vm1, %vm111_vm3  ;;  %vm107_vm13 = vcmp.lt.s32.totalorder %v70_v11, %v473_v9  ;;  %vm106_vm0 = vcmp.lt.s32.totalorder %v69_v13, %v473_v9  ;;  %v67_v15 = vadd.s32 64, %v465_v2  ;;  %vm105_vm3 = vcmp.lt.s32.totalorder %v68_v14, %v473_v9  ;;  %p408_p4 = por %p407_p3, %p406_p2 }
  0x2c   :  { %300 = vmatpush3.msk.msra.mxu0 %vm127_vm7, %v432_v12  ;;  %vm126_vm8 = vmand %vm92_vm2, %vm110_vm4  ;;  %vm87_vm2 = vcmp.ge.s32.totalorder %v68_v14, %v468_v5  ;;  %v66_v16 = vadd.s32 56, %v465_v2  ;;  %v65_v17 = vadd.s32 48, %v465_v2  ;;  %v64_v18 = vadd.s32 40, %v465_v2 }
  0x2d   :  { %301 = vmatprep.subr.mxu0 %v430_v1  ;;  %vm125_vm11 = vmand %vm91_vm5, %vm109_vm6  ;;  %vm86_vm5 = vcmp.ge.s32.totalorder %v67_v15, %v468_v5  ;;  %vm104_vm6 = vcmp.lt.s32.totalorder %v67_v15, %v473_v9  ;;  %v63_v19 = vadd.s32 32, %v465_v2  ;;  %v62_v20 = vadd.s32 24, %v465_v2  ;;  %p409_p5 = pnand %p408_p4, %p402_p1 }
  0x2e   :  { %302 = vmatpush3.msk.msra.mxu0 %vm126_vm8, %v432_v12  ;;  %vm124_vm14 = vmand %vm90_vm9, %vm108_vm10  ;;  %vm85_vm8 = vcmp.ge.s32.totalorder %v66_v16, %v468_v5  ;;  %vm103_vm9 = vcmp.lt.s32.totalorder %v66_v16, %v473_v9  ;;  %v61_v22 = vadd.s32 16, %v465_v2  ;;  %v60_v25 = vadd.s32 8, %v465_v2 }
  0x2f   :  { %303 = vmatprep.subr.mxu0 %v430_v1  ;;  %vm123_vm1 = vmand %vm89_vm12, %vm107_vm13  ;;  %vm102_vm12 = vcmp.lt.s32.totalorder %v65_v17, %v473_v9  ;;  %v53_v26 = vsub.f32 %v50_v21, %v51_v23  ;;  %v54_v27 = vsub.f32 %v50_v21, %v52_v24 }
  0x30   :  { %304 = vmatpush3.msk.msra.mxu0 %vm125_vm11, %v432_v12  ;;  %vm122_vm4 = vmand %vm88_vm15, %vm106_vm0  ;;  %vm84_vm11 = vcmp.ge.s32.totalorder %v65_v17, %v468_v5  ;;  %vm101_vm15 = vcmp.lt.s32.totalorder %v64_v18, %v473_v9 }
  0x31   :  { %305 = vmatprep.subr.mxu0 %v430_v1  ;;  %vm121_vm7 = vmand %vm87_vm2, %vm105_vm3  ;;  %vm100_vm2 = vcmp.lt.s32.totalorder %v63_v19, %v473_v9  ;;  %v55_v28 = vmul.f32 %v53_v26, %v53_v26  ;;  %v56_v29 = vmul.f32 %v54_v27, %v54_v27 }
  0x32   :  { %306 = vmatpush3.msk.msra.mxu0 %vm124_vm14, %v432_v12  ;;  %vm120_vm10 = vmand %vm86_vm5, %vm104_vm6  ;;  %vm83_vm14 = vcmp.ge.s32.totalorder %v64_v18, %v468_v5  ;;  %vm99_vm5 = vcmp.lt.s32.totalorder %v62_v20, %v473_v9 }
  0x33   :  { %307 = vmatprep.subr.mxu0 %v430_v1  ;;  %vm119_vm13 = vmand %vm85_vm8, %vm103_vm9  ;;  %vm98_vm8 = vcmp.lt.s32.totalorder %v61_v22, %v473_v9  ;;  %v57_v30 = vsub.f32 %v55_v28, %v56_v29 }
  0x34   :  { %308 = vmatpush3.msk.msra.mxu0 %vm123_vm1, %v432_v12  ;;  %vm118_vm0 = vmand %vm84_vm11, %vm102_vm12  ;;  %vm82_vm1 = vcmp.ge.s32.totalorder %v63_v19, %v468_v5  ;;  %vm97_vm11 = vcmp.lt.s32.totalorder %v60_v25, %v473_v9 }
  0x35   :  { %309 = vmatprep.subr.mxu0 %v430_v1  ;;  %vm117_vm3 = vmand %vm83_vm14, %vm101_vm15  ;;  %vm96_vm14 = vcmp.lt.s32.totalorder %v465_v2, %v473_v9 }
  0x36   :  { %310 = vmatpush3.msk.msra.mxu0 %vm122_vm4, %v432_v12  ;;  %vm81_vm4 = vcmp.ge.s32.totalorder %v62_v20, %v468_v5  ;;  %vm116_vm6 = vmand %vm82_vm1, %vm100_vm2  ;;  %vm232_vm1 = vcmask 27648  }
  0x37   :  { %311 = vmatprep.subr.mxu0 %v430_v1  ;;  %vm115_vm9 = vmand %vm81_vm4, %vm99_vm5 }
  0x38   :  { %312 = vmatpush3.msk.msra.mxu0 %vm121_vm7, %v432_v12  ;;  %vm80_vm7 = vcmp.ge.s32.totalorder %v61_v22, %v468_v5 }
  0x39   :  { %313 = vmatprep.subr.mxu0 %v430_v1  ;;  %vm114_vm12 = vmand %vm80_vm7, %vm98_vm8 }
  0x3a   :  { %314 = vmatpush3.msk.msra.mxu0 %vm120_vm10, %v432_v12  ;;  %vm79_vm10 = vcmp.ge.s32.totalorder %v60_v25, %v468_v5 }
  0x3b   :  { %315 = vmatprep.subr.mxu0 %v430_v1  ;;  %vm113_vm15 = vmand %vm79_vm10, %vm97_vm11 }
  0x3c   :  { %316 = vmatpush3.msk.msra.mxu0 %vm119_vm13, %v432_v12  ;;  %vm78_vm13 = vcmp.ge.s32.totalorder %v465_v2, %v468_v5 }
  0x3d   :  { %317 = vmatprep.subr.mxu0 %v430_v1 }
  0x3e   :  { %318 = vmatpush3.msk.msra.mxu0 %vm118_vm0, %v432_v12  ;;  %vm112_vm0 = vmand %vm78_vm13, %vm96_vm14 }
  0x3f   :  { %319 = vmatprep.subr.mxu0 %v430_v1 }
  0x40   :  { %320 = vmatpush3.msk.msra.mxu0 %vm117_vm3, %v432_v12 }
  0x41   :  { %321 = vmatprep.subr.mxu0 %v430_v1 }
  0x42   :  { %322 = vmatpush3.msk.msra.mxu0 %vm116_vm6, %v432_v12 }
  0x43   :  { %323 = vmatprep.subr.mxu0 %v430_v1 }
  0x44   :  { %324 = vmatpush3.msk.msra.mxu0 %vm115_vm9, %v432_v12 }
  0x45   :  { %325 = vmatprep.subr.mxu0 %v430_v1 }
  0x46   :  { %326 = vmatpush3.msk.msra.mxu0 %vm114_vm12, %v432_v12 }
  0x47   :  { %327 = vmatprep.subr.mxu0 %v430_v1 }
  0x48   :  { %328 = vmatpush3.msk.msra.mxu0 %vm113_vm15, %v432_v12 }
  0x49   :  { %329 = vmatprep.subr.mxu0 %v430_v1 }
  0x4a   :  { %330 = vmatpush3.msk.msra.mxu0 %vm112_vm0, %v432_v12 }
  0x4b   :  { %332 = vmatmul.mubr.f32.vlgmr.msra.gmra.mxu0 %v57_v30 }
 0x10b   :  { %v226_v31 = vpop.f32.mrf.mxu0 }
 0x10c   :  { %v230_v32 = vadd.f32 1.0, %v226_v31 }
 0x10d   :  { %v333_v33 = vpop.f32.mrf.mxu0 }
 0x10e   :  { %v231_v34 = vmax.f32 %v230_v32, 0.0 }
 0x110   :  { %233 = vst.msk [vmem:[#allocation8] sm:$0xf] %vm232_vm1, %v231_v34 }
 0x111   :  { %412 = shalt.err (!%p409_p5)
}
 0x112   :  { %243 = dma.vmem_to_hbm [thread:$0]  %s241_s2, 64, %s557_s3, [#allocation4]  }
 0x113   :  { %425 = dma.done.wait [#allocation4], 64  }
 0x114   :  { %426 = vsyncadd [#allocation4], 4294967232 }
 0x115   :  { %247 = vsyncpa [#allocation3], 1 }
 0x116   :  { %248 = vsyncpa [#allocation6], 1 }
 0x117   :  { %249 = vsyncpa [#allocation4], 1 }

</bundles_post_ra>
